<compile_context>
chip_gen: v5e
topology: v5e:2x2
jax: 0.10.0
libtpu: 0.0.40
codegen_flags: <defaults>
</compile_context>

<pallas_src>
import functools

import jax
import jax.numpy as jnp
from jax.experimental import pallas as pl
from jax.experimental.pallas import tpu as pltpu

_LANES = 128


def _round_up(x, m):
    return ((x + m - 1) // m) * m


def _accuracy_kernel(kvals_ref, pred_ref, tgt_ref, out_ref, *, scale):
    """Accumulate per-k correct counts for one batch tile.

    kvals_ref: (1, 128) int32, kvals[0, j] = topk[j] for j < K else 0 (resident)
    pred_ref:  (TILE_N, C_pad) native dtype
    tgt_ref:   (TILE_N, 1) int32
    out_ref:   (1, 128) float32 accumulator, resident across the grid
    """
    step = pl.program_id(0)

    @pl.when(step == 0)
    def _init():
        out_ref[...] = jnp.zeros_like(out_ref)

    pred = pred_ref[...].astype(jnp.float32)          # (TILE_N, C_pad)
    tgt = tgt_ref[...]                                # (TILE_N, 1) int32
    tn, c = pred.shape

    # One-hot of the target class via an iota compare (no gather needed).
    class_ids = jax.lax.broadcasted_iota(jnp.int32, (tn, c), 1)
    onehot = class_ids == tgt                         # (TILE_N, C_pad) bool

    # Score of the target class (exactly one hit per real row; padded rows -> 0).
    tgt_score = jnp.sum(jnp.where(onehot, pred, 0.0), axis=1, keepdims=True)

    # rank = number of classes with a strictly greater score (int32, lane reduce).
    rank = jnp.sum((pred > tgt_score).astype(jnp.int32), axis=1, keepdims=True)

    # Default threshold (thrs=None -> 0.0): the matching score must be > 0.
    valid = tgt_score > 0.0                           # (TILE_N, 1) bool

    # Padded k lanes hold 0, and rank >= 0, so they never contribute.
    kvals = kvals_ref[...]                            # (1, 128) int32
    correct = jnp.logical_and(rank < kvals, valid)    # (TILE_N, 128) bool
    out_ref[...] += jnp.sum(correct.astype(jnp.float32), axis=0, keepdims=True)

    @pl.when(step == pl.num_programs(0) - 1)
    def _finalize():
        out_ref[...] = out_ref[...] * scale           # scale = 100 / N_total


def pallas_accuracy(pred, target, topk=(1,), *, tile_n=None):
    """Top-k accuracy (percent) computed in a Pallas TPU kernel.

    pred:   (N, C) float array
    target: (N,)   integer array
    Returns a (len(topk),) float32 device array.
    """
    if isinstance(topk, int):
        topk = (topk,)
    assert isinstance(topk, tuple) and len(topk) >= 1
    k_count = len(topk)
    assert k_count <= _LANES

    n, c = pred.shape
    assert n >= 1

    if not jnp.issubdtype(pred.dtype, jnp.floating):
        pred = pred.astype(jnp.float32)
    itemsize = jnp.dtype(pred.dtype).itemsize
    # sublane multiple for the batch tile (f32: 8, bf16/f16: 16, 1-byte: 32)
    sub = {4: 8, 2: 16, 1: 32}.get(itemsize, 8)

    # Pad the class dim to a multiple of 128 lanes so loads are unmasked;
    # padding with the most negative value never changes the ranking.
    c_pad = _round_up(c, _LANES)
    if c_pad != c:
        pred = jnp.pad(pred, ((0, 0), (0, c_pad - c)),
                       constant_values=jnp.finfo(pred.dtype).min)

    # Batch tile: biggest sublane-aligned tile whose double-buffered pred block
    # fits a conservative VMEM budget (safe on v5e/v6e/v7x scoped limits).
    if tile_n is None:
        budget = 8 * 1024 * 1024
        max_tile = max(sub, (budget // (2 * c_pad * itemsize)) // sub * sub)
        tile_n = min(_round_up(n, sub), 1024, max_tile)
    tile_n = max(sub, (int(tile_n) // sub) * sub)
    n_pad = _round_up(n, tile_n)
    if n_pad != n:
        # Zero rows: target score 0 fails the >0 threshold -> never counted.
        pred = jnp.pad(pred, ((0, n_pad - n), (0, 0)))
        target = jnp.pad(target, (0, n_pad - n))

    tgt2d = target.astype(jnp.int32).reshape(n_pad, 1)
    kvals = jnp.zeros((1, _LANES), jnp.int32).at[0, :k_count].set(
        jnp.asarray(topk, dtype=jnp.int32))

    grid = (n_pad // tile_n,)
    out = pl.pallas_call(
        functools.partial(_accuracy_kernel, scale=100.0 / n),
        out_shape=jax.ShapeDtypeStruct((1, _LANES), jnp.float32),
        grid_spec=pltpu.PrefetchScalarGridSpec(
            num_scalar_prefetch=0,
            grid=grid,
            in_specs=[
                pl.BlockSpec((1, _LANES), lambda i: (0, 0)),       # topk values
                pl.BlockSpec((tile_n, c_pad), lambda i: (i, 0)),   # pred tile
                pl.BlockSpec((tile_n, 1), lambda i: (i, 0)),       # target tile
            ],
            out_specs=pl.BlockSpec((1, _LANES), lambda i: (0, 0)),
        ),
        compiler_params=pltpu.CompilerParams(
            dimension_semantics=("arbitrary",),
            vmem_limit_bytes=32 * 1024 * 1024,
        ),
    )(kvals, pred, tgt2d)

    # TODO(synk): on v7x a leading 2-wide "parallel" grid axis could split the
    # batch across both TensorCores (each with its own accumulator row).
    return out[0, :k_count]


class AccuracyPallas:
    """Mirror of mmcls Accuracy module (no parameters)."""

    def __init__(self, topk=(1,)):
        self.topk = topk

    def __call__(self, pred, target):
        accs = pallas_accuracy(pred, target, self.topk)
        # Single device->host transfer, then plain python floats (mmcls returns
        # a list of accuracies, one per topk).
        return [float(v) for v in jax.device_get(accs)]


def _reference_accuracy(pred, target, topk):
    """Pure-JAX reference matching accuracy_numpy/accuracy_torch (thrs=None)."""
    n, _ = pred.shape
    tgt_score = jnp.take_along_axis(
        pred.astype(jnp.float32), target.reshape(-1, 1).astype(jnp.int32), axis=1)
    rank = jnp.sum(pred.astype(jnp.float32) > tgt_score, axis=1, keepdims=True)
    valid = tgt_score > 0.0
    return [float(jnp.sum(jnp.logical_and(rank < k, valid)) * 100.0 / n)
            for k in topk]


if __name__ == "__main__":
    key = jax.random.PRNGKey(0)
    kp1, kt1, kp2, kt2 = jax.random.split(key, 4)
    topk = (1, 5)

    # --- case 1: small batch, single grid step --------------------------
    N1, C1 = 8, 32
    pred1 = jax.random.normal(kp1, (N1, C1), dtype=jnp.float32)
    target1 = jax.random.randint(kt1, (N1,), 0, C1, dtype=jnp.int32)

    module = AccuracyPallas(topk=topk)
    accs1 = module(pred1, target1)                      # list[float]
    jax.block_until_ready(jnp.asarray(accs1))
    ref1 = _reference_accuracy(pred1, target1, topk)
    for a, r in zip(accs1, ref1):
        assert abs(a - r) < 1e-3, (accs1, ref1)

    # --- case 2: exercises class-dim padding + multi-step accumulation --
    N2, C2 = 32, 200
    pred2 = jax.random.normal(kp2, (N2, C2), dtype=jnp.float32)
    target2 = jax.random.randint(kt2, (N2,), 0, C2, dtype=jnp.int32)
    accs2 = pallas_accuracy(pred2, target2, topk, tile_n=8)   # grid = (4,)
    accs2 = jax.block_until_ready(accs2)
    ref2 = _reference_accuracy(pred2, target2, topk)
    for a, r in zip(jax.device_get(accs2), ref2):
        assert abs(float(a) - r) < 1e-3, (list(jax.device_get(accs2)), ref2)

    print("KERNEL_OK")
</pallas_src>

<mosaic_0001>
module attributes {stable_mosaic.version = 11 : i64} {
  func.func @_accuracy_kernel(%arg0: i32, %arg1: memref<1x128xi32, #tpu.memory_space<vmem>>, %arg2: memref<8x128xf32, #tpu.memory_space<vmem>>, %arg3: memref<8x1xi32, #tpu.memory_space<vmem>>, %arg4: memref<1x128xf32, #tpu.memory_space<vmem>>) attributes {dimension_semantics = [#tpu.dimension_semantics<arbitrary>], iteration_bounds = array<i64: 1>, scalar_prefetch = 0 : i64, scratch_operands = 0 : i64, tpu.core_type = #tpu.core_type<tc>, window_params = [{pipeline_mode = #tpu.pipeline_mode<synchronous>, transform_indices = @transform_0, window_bounds = array<i64: 1, 128>}, {transform_indices = @transform_1, window_bounds = array<i64: 8, 128>}, {transform_indices = @transform_2, window_bounds = array<i64: 8, 1>}, {pipeline_mode = #tpu.pipeline_mode<synchronous>, transform_indices = @transform_3, window_bounds = array<i64: 1, 128>}]} {
    %c0_i32 = arith.constant 0 : i32
    %0 = arith.cmpi eq, %arg0, %c0_i32 : i32
    %1 = arith.extui %0 : i1 to i32
    %c0_i32_0 = arith.constant 0 : i32
    %2 = arith.cmpi ne, %1, %c0_i32_0 : i32
    scf.if %2 {
      %cst_16 = arith.constant 0.000000e+00 : f32
      %35 = vector.broadcast %cst_16 : f32 to vector<1x128xf32>
      %c0_17 = arith.constant 0 : index
      %c0_18 = arith.constant 0 : index
      %36 = vector.load %arg4[%c0_17, %c0_18] : memref<1x128xf32, #tpu.memory_space<vmem>>, vector<1x128xf32>
      tpu.vector_store %arg4[%c0_17, %c0_18], %35 {strides = array<i32>} : memref<1x128xf32, #tpu.memory_space<vmem>>, vector<1x128xf32>,
    } else {
    }
    %c0 = arith.constant 0 : index
    %c0_1 = arith.constant 0 : index
    %3 = vector.load %arg2[%c0, %c0_1] : memref<8x128xf32, #tpu.memory_space<vmem>>, vector<8x128xf32>
    %c0_2 = arith.constant 0 : index
    %c0_3 = arith.constant 0 : index
    %4 = vector.load %arg3[%c0_2, %c0_3] : memref<8x1xi32, #tpu.memory_space<vmem>>, vector<8x1xi32>
    %5 = tpu.iota {dimensions = array<i32: 1>} : vector<8x128xi32>
    %6 = vector.broadcast %4 : vector<8x1xi32> to vector<8x128xi32>
    %7 = arith.cmpi eq, %5, %6 : vector<8x128xi32>
    %cst = arith.constant 0.000000e+00 : f32
    %8 = vector.broadcast %cst : f32 to vector<8x128xf32>
    %9 = arith.select %7, %3, %8 : vector<8x128xi1>, vector<8x128xf32>
    %cst_4 = arith.constant dense<0.000000e+00> : vector<8xf32>
    %10 = vector.multi_reduction <add>, %9, %cst_4 [1] : vector<8x128xf32> to vector<8xf32>
    %11 = vector.shape_cast %10 : vector<8xf32> to vector<8x1xf32>
    %12 = vector.broadcast %11 : vector<8x1xf32> to vector<8x128xf32>
    %13 = arith.cmpf ogt, %3, %12 : vector<8x128xf32>
    %14 = arith.extui %13 : vector<8x128xi1> to vector<8x128xi32>
    %cst_5 = arith.constant dense<0> : vector<8xi32>
    %15 = vector.multi_reduction <add>, %14, %cst_5 [1] : vector<8x128xi32> to vector<8xi32>
    %16 = vector.shape_cast %15 : vector<8xi32> to vector<8x1xi32>
    %cst_6 = arith.constant 0.000000e+00 : f32
    %17 = vector.broadcast %cst_6 : f32 to vector<8x1xf32>
    %18 = arith.cmpf ogt, %11, %17 : vector<8x1xf32>
    %c0_7 = arith.constant 0 : index
    %c0_8 = arith.constant 0 : index
    %19 = vector.load %arg1[%c0_7, %c0_8] : memref<1x128xi32, #tpu.memory_space<vmem>>, vector<1x128xi32>
    %20 = vector.broadcast %16 : vector<8x1xi32> to vector<8x128xi32>
    %21 = vector.broadcast %19 : vector<1x128xi32> to vector<8x128xi32>
    %22 = arith.cmpi slt, %20, %21 : vector<8x128xi32>
    %23 = vector.broadcast %18 : vector<8x1xi1> to vector<8x128xi1>
    %24 = arith.andi %22, %23 : vector<8x128xi1>
    %c0_9 = arith.constant 0 : index
    %c0_10 = arith.constant 0 : index
    %25 = vector.load %arg4[%c0_9, %c0_10] : memref<1x128xf32, #tpu.memory_space<vmem>>, vector<1x128xf32>
    %26 = arith.extui %24 : vector<8x128xi1> to vector<8x128xi32>
    %27 = arith.sitofp %26 : vector<8x128xi32> to vector<8x128xf32>
    %cst_11 = arith.constant dense<0.000000e+00> : vector<128xf32>
    %28 = vector.multi_reduction <add>, %27, %cst_11 [0] : vector<8x128xf32> to vector<128xf32>
    %29 = vector.shape_cast %28 : vector<128xf32> to vector<1x128xf32>
    %30 = arith.addf %25, %29 : vector<1x128xf32>
    %c0_12 = arith.constant 0 : index
    %c0_13 = arith.constant 0 : index
    %31 = vector.load %arg4[%c0_12, %c0_13] : memref<1x128xf32, #tpu.memory_space<vmem>>, vector<1x128xf32>
    tpu.vector_store %arg4[%c0_12, %c0_13], %30 {strides = array<i32>} : memref<1x128xf32, #tpu.memory_space<vmem>>, vector<1x128xf32>,
    %c0_i32_14 = arith.constant 0 : i32
    %32 = arith.cmpi eq, %arg0, %c0_i32_14 : i32
    %33 = arith.extui %32 : i1 to i32
    %c0_i32_15 = arith.constant 0 : i32
    %34 = arith.cmpi ne, %33, %c0_i32_15 : i32
    scf.if %34 {
      %c0_16 = arith.constant 0 : index
      %c0_17 = arith.constant 0 : index
      %35 = vector.load %arg4[%c0_16, %c0_17] : memref<1x128xf32, #tpu.memory_space<vmem>>, vector<1x128xf32>
      %cst_18 = arith.constant 1.250000e+01 : f32
      %36 = vector.broadcast %cst_18 : f32 to vector<1x128xf32>
      %37 = arith.mulf %35, %36 : vector<1x128xf32>
      %c0_19 = arith.constant 0 : index
      %c0_20 = arith.constant 0 : index
      %38 = vector.load %arg4[%c0_19, %c0_20] : memref<1x128xf32, #tpu.memory_space<vmem>>, vector<1x128xf32>
      tpu.vector_store %arg4[%c0_19, %c0_20], %37 {strides = array<i32>} : memref<1x128xf32, #tpu.memory_space<vmem>>, vector<1x128xf32>,
    } else {
    }
    return
  }
  func.func @transform_0(%arg0: i32) -> (i32, i32) {
    %c0_i32 = arith.constant 0 : i32
    %c0_i32_0 = arith.constant 0 : i32
    %c0_i32_1 = arith.constant 0 : i32
    return %c0_i32, %c0_i32_0 : i32, i32
  }
  func.func @transform_1(%arg0: i32) -> (i32, i32) {
    %c0_i32 = arith.constant 0 : i32
    %c0_i32_0 = arith.constant 0 : i32
    return %arg0, %c0_i32 : i32, i32
  }
  func.func @transform_2(%arg0: i32) -> (i32, i32) {
    %c0_i32 = arith.constant 0 : i32
    %c0_i32_0 = arith.constant 0 : i32
    return %arg0, %c0_i32 : i32, i32
  }
  func.func @transform_3(%arg0: i32) -> (i32, i32) {
    %c0_i32 = arith.constant 0 : i32
    %c0_i32_0 = arith.constant 0 : i32
    %c0_i32_1 = arith.constant 0 : i32
    return %c0_i32, %c0_i32_0 : i32, i32
  }
}

</mosaic_0001>

<bundles_post_ra>
// kernel: tpu_custom_call.1
= control target key start
LH: loop header
LB: loop body
LE: loop exit
PB: predicated region body
PF: predicated region fallthrough
CT: control target
= control target key end

     0   :  { %s152_s0 = inlined_call_operand.vmem [shape: s32[1,128], index: 0, kind: input, shape index: {}]   ;;  %s153_s1 = inlined_call_operand.vmem [shape: f32[8,128], index: 1, kind: input, shape index: {}]   ;;  %s154_s2 = inlined_call_operand.vmem [shape: s32[8,1], index: 2, kind: input, shape index: {}]   ;;  %s155_s3 = inlined_call_operand.hbm [shape: f32[1,128], index: 3, kind: output, shape index: {}]  }
   0x1   :  { %v21_v0 = vld [vmem:[%s154_s2] sm:$0xff] }
   0x2   :  { %8 = vsyncpa [#allocation3], 0  ;;  %v117_v1 = vmov 0   ;;  %v22_v2 = vlaneseq  ;;  %v20_v4 = vld [vmem:[%s153_s1] sm:$0xff]  ;;  %v118_v13 = vmov 0.0   ;;  %s119_s16 = smov [#allocation2]  }
   0x3   :  { %89 = vset.pattern.permute.xlu0 %v117_v1  ;;  %19 = vst [vmem:[#allocation2] sm:$0x1] %v118_v13  ;;  %v90_v18 = vld [vmem:[%s152_s0] ss:$0 sm:$0xff]  ;;  %s74_s17 = sshll.u32 %s119_s16, 4  ;;  %s76_s0 = sshll.u32 %s155_s3, 4  ;;  %s75_s17 = int_to_ptr.vmem [resolvable:$true] %s74_s17  ;;  %s77_s0 = int_to_ptr.hbm [resolvable:$true] %s76_s0 }
   0x4   :  { %25 = vperm.xlu0 %89, %v21_v0   ;;  %v23_v3 = vand.u32 127, %v22_v2 }
   0xa   :  { %v52_v27 = vld [vmem:[#allocation2] sm:$0x1] }
  0x76   :  { %v26_v5 = vpop.permute.xlu0 %25 }
  0x77   :  { %vm27_vm0 = vcmp.eq.s32.totalorder %v23_v3, %v26_v5 }
  0x78   :  { %v28_v6 = vsel %vm27_vm0, %v20_v4, 0.0 }
  0x79   :  { %29 = vadd.xlane.f32.xlu0 %v28_v6 }
  0xec   :  { %v30_v7 = vpop.xlane.xlu0 %29 }
  0xed   :  { %vm31_vm1 = vcmp.gt.f32.partialorder %v20_v4, %v30_v7  ;;  %vm45_vm2 = vcmp.gt.f32.partialorder %v30_v7, 0.0 }
  0xee   :  { %v32_v8 = vsel %vm31_vm1, 1, %v117_v1 }
  0xef   :  { %v34_v9 = vshrl.u32 %v32_v8, 16  ;;  %v33_v11 = vand.u32 65535, %v32_v8 }
  0xf1   :  { %v36_v10 = vcvt.s32.f32 %v34_v9  ;;  %v35_v12 = vcvt.s32.f32 %v33_v11 }
  0xf3   :  { %39 = vadd.xlane.f32.xlu1 %v36_v10 }
  0xfb   :  { %37 = vadd.xlane.f32.xlu1 %v35_v12 }
 0x166   :  { %v40_v14 = vpop.xlane.xlu1 %39 }
 0x167   :  { %v42_v15 = vcvt.f32.s32 %v40_v14 }
 0x169   :  { %v43_v17 = vshll.u32 %v42_v15, 16 }
 0x16e   :  { %v38_v16 = vpop.xlane.xlu1 %37 }
 0x16f   :  { %v41_v19 = vcvt.f32.s32 %v38_v16 }
 0x171   :  { %v44_v20 = vadd.s32 %v43_v17, %v41_v19 }
 0x173   :  { %vm48_vm3 = vcmp.lt.s32.totalorder %v44_v20, %v90_v18 }
 0x174   :  { %vm51_vm4 = vmand %vm48_vm3, %vm45_vm2 }
 0x175   :  { %v85_v21 = vsel %vm51_vm4, 1.0, %v118_v13 }
 0x176   :  { %v55_v22 = vrot.slane %v85_v21, 4 }
 0x178   :  { %v56_v23 = vadd.f32 %v85_v21, %v55_v22 }
 0x17a   :  { %v57_v24 = vrot.slane %v56_v23, 2 }
 0x17c   :  { %v58_v25 = vadd.f32 %v57_v24, %v56_v23 }
 0x17e   :  { %v59_v26 = vrot.slane %v58_v25, 1 }
 0x180   :  { %v60_v28 = vadd.f32 %v59_v26, %v58_v25 }
 0x182   :  { %v61_v29 = vadd.f32 %v60_v28, %v52_v27 }
 0x184   :  { %62 = vst [vmem:[#allocation2] sm:$0x1] %v61_v29 }
 0x18b   :  { %v66_v30 = vld [vmem:[#allocation2] sm:$0x1] }
 0x18c   :  { %v67_v31 = vmul.f32 12.5, %v66_v30 }
 0x18e   :  { %68 = vst [vmem:[#allocation2] sm:$0x1] %v67_v31 }
 0x18f   :  { %79 = dma.vmem_to_hbm [thread:$0]  %s75_s17, 16, %s77_s0, [#allocation3]  }
 0x190   :  { %115 = dma.done.wait [#allocation3], 16  }
 0x191   :  { %116 = vsyncadd [#allocation3], 4294967280 }
 0x192   :  { %84 = vsyncpa [#allocation3], 1 }

</bundles_post_ra>
